<compile_context>
chip_gen: v5e
topology: v5e:2x2
jax: 0.10.0
libtpu: 0.0.40
codegen_flags: <defaults>
</compile_context>

<pallas_src>
import math

import jax
import jax.numpy as jnp
import numpy as np
from jax.experimental import pallas as pl
from jax.experimental.pallas import tpu as pltpu


# ---------------------------------------------------------------------------
# Parameter folding (glue, plain JAX): "same"-padded Conv1d over the channel
# axis == multiplication by a banded Toeplitz matrix built from the (k,) weight.
# We return it pre-transposed so the kernel computes conv = pooled @ band_T.
# ---------------------------------------------------------------------------
def conv1d_weight_to_band_t(weight, C):
    """weight: (k,) Conv1d(1,1,k,bias=False) weight -> (C, C) band matrix, transposed."""
    k = int(weight.shape[0])
    pad = k // 2
    band = jnp.zeros((C, C), jnp.float32)
    for j in range(k):
        # (band @ pooled)[c] = sum_j w[j] * pooled[c + j - pad]  (zeros outside)
        band = band + weight[j] * jnp.eye(C, C, j - pad, dtype=jnp.float32)
    return band.T  # so that conv[b, c] = (pooled @ band.T)[b, c]


# ---------------------------------------------------------------------------
# Pallas kernel: one grid step == TB batch items, each a (C, HWp) slab.
# ---------------------------------------------------------------------------
def channel_attention_kernel(x_ref, band_t_ref, scal_ref, o_ref):
    # x_ref / o_ref : (TB, C, HWp)   band_t_ref : (C, C)   scal_ref (SMEM): [alpha, 1/HW]
    alpha = scal_ref[0]
    inv_hw = scal_ref[1]

    x = x_ref[...]                                            # (TB, C, HWp), input dtype

    # AdaptiveAvgPool2d(1): mean over the spatial (lane) axis, accumulated in f32.
    # (Padded lanes are zero, so dividing by the true HW is exact.)
    pooled = jnp.sum(x.astype(jnp.float32), axis=-1) * inv_hw  # (TB, C)

    # Channel "same" conv as one small batched MXU matmul: (TB,C) @ (C,C).
    conv = jnp.dot(pooled, band_t_ref[...],
                   preferred_element_type=jnp.float32)         # (TB, C)

    # out = alpha * sigmoid(conv) * x + x  ==  x * (1 + alpha * sigmoid(conv))
    # Keep the dominant elementwise pass in the input dtype (cast scale down).
    scale = (1.0 + alpha * jax.nn.sigmoid(conv)).astype(x.dtype)  # (TB, C)

    # Single lane-dense, whole-block store (one unmasked vst stream).
    o_ref[...] = x * scale[:, :, None]


# ---------------------------------------------------------------------------
# Wrapper
# ---------------------------------------------------------------------------
def channel_attention(x, conv_weight, alpha, *, block_budget_bytes=8 << 20):
    """x: (B, C, H, W), conv_weight: (k,), alpha: scalar  ->  (B, C, H, W)."""
    B, C, H, W = x.shape
    HW = H * W
    HWp = ((HW + 127) // 128) * 128                 # lane-dense last dim (multiple of 128)

    x3 = x.reshape(B, C, HW)
    if HWp != HW:
        x3 = jnp.pad(x3, ((0, 0), (0, 0), (0, HWp - HW)))   # zero pad -> pool stays exact

    band_t = conv1d_weight_to_band_t(jnp.asarray(conv_weight, jnp.float32), C)
    scal = jnp.stack([jnp.asarray(alpha, jnp.float32).reshape(()),
                      jnp.float32(1.0 / HW)])               # (2,) SMEM scalars

    itemsize = x.dtype.itemsize
    per_item_bytes = C * HWp * itemsize
    if per_item_bytes > block_budget_bytes:
        # TODO(synk): add an HW-chunk grid axis (reduction axis, pooled accumulator in
        # scratch, two-sweep scale) for very large C*H*W instead of failing here.
        raise NotImplementedError(
            f"single-item slab ({per_item_bytes} B) exceeds the VMEM block budget "
            f"({block_budget_bytes} B); spatial tiling path not implemented")

    # TB = batch items per grid step: largest divisor of B whose block fits the
    # budget, while keeping >= 2 grid steps (so v7x can shard across its 2 TCs).
    min_steps = 2 if B >= 2 else 1
    tb = 1
    for cand in range(1, B + 1):
        if (B % cand == 0
                and cand * per_item_bytes <= block_budget_bytes
                and B // cand >= min_steps):
            tb = cand
    grid = (B // tb,)

    # Scoped-VMEM limit derived from the real double-buffered footprint:
    # 2 buffers x (input + output) blocks + the (C,C) band + slack for temps.
    block_bytes = tb * per_item_bytes
    vmem_need = 4 * block_bytes + 2 * C * C * 4 + (4 << 20)
    vmem_limit = int(max(16 << 20, min(vmem_need, 48 << 20)))

    out = pl.pallas_call(
        channel_attention_kernel,
        out_shape=jax.ShapeDtypeStruct((B, C, HWp), x.dtype),
        grid_spec=pltpu.PrefetchScalarGridSpec(
            num_scalar_prefetch=0,
            grid=grid,
            in_specs=[
                pl.BlockSpec((tb, C, HWp), lambda i: (i, 0, 0)),       # x slab
                pl.BlockSpec((C, C), lambda i: (0, 0)),                # folded conv band^T
                pl.BlockSpec(memory_space=pltpu.MemorySpace.SMEM),     # [alpha, 1/HW]
            ],
            out_specs=pl.BlockSpec((tb, C, HWp), lambda i: (i, 0, 0)),
        ),
        compiler_params=pltpu.CompilerParams(
            dimension_semantics=("parallel",),
            vmem_limit_bytes=vmem_limit,
        ),
    )(x3, band_t, scal)

    if HWp != HW:
        out = out[:, :, :HW]
    return out.reshape(B, C, H, W)


# ---------------------------------------------------------------------------
# Pure-JAX reference (mirrors the PyTorch forward exactly)
# ---------------------------------------------------------------------------
def channel_attention_ref(x, conv_weight, alpha):
    B, C, H, W = x.shape
    pooled = jnp.mean(x, axis=(2, 3))                             # (B, C)
    k = int(conv_weight.shape[0])
    pad = k // 2
    p = jnp.pad(pooled, ((0, 0), (pad, pad)))                     # zero "same" pad
    conv = sum(conv_weight[j] * p[:, j:j + C] for j in range(k))  # (B, C)
    w = jax.nn.sigmoid(conv)[:, :, None, None]                    # (B, C, 1, 1)
    out = w * x
    return alpha * out + x


# ---------------------------------------------------------------------------
if __name__ == "__main__":
    # Kernel size exactly as the module computes it from C (b=1, gamma=2).
    def eca_k(C, b_hyper=1, gamma_hyper=2):
        t = int(abs((math.log(C, 2) + b_hyper) / gamma_hyper))
        return t if t % 2 else t + 1

    key = jax.random.PRNGKey(0)

    # Case 1: small shapes consistent with the module; HW already 128-aligned.
    B, C, H, W = 2, 16, 16, 16
    k = eca_k(C)                                                  # -> 3
    k1, k2, k3 = jax.random.split(key, 3)
    x = jax.random.normal(k1, (B, C, H, W), jnp.float32)
    conv_w = 0.5 * jax.random.normal(k2, (k,), jnp.float32)
    # Module initializes alpha to 0 (output == x); use a nonzero value so the
    # attention path is actually exercised by the check.
    alpha = jnp.float32(0.3)

    out = jax.block_until_ready(channel_attention(x, conv_w, alpha))
    ref = channel_attention_ref(x, conv_w, alpha)
    np.testing.assert_allclose(np.asarray(out), np.asarray(ref),
                               rtol=1e-5, atol=1e-5)

    # Case 2: non-128-aligned spatial size exercises the lane-padding path.
    B2, C2, H2, W2 = 2, 16, 10, 10
    x2 = jax.random.normal(k3, (B2, C2, H2, W2), jnp.float32)
    out2 = jax.block_until_ready(channel_attention(x2, conv_w, alpha))
    ref2 = channel_attention_ref(x2, conv_w, alpha)
    np.testing.assert_allclose(np.asarray(out2), np.asarray(ref2),
                               rtol=1e-5, atol=1e-5)

    print("KERNEL_OK")
</pallas_src>

<mosaic_0001>
module attributes {stable_mosaic.version = 11 : i64} {
  func.func @channel_attention_kernel(%arg0: i32, %arg1: memref<1x16x256xf32, #tpu.memory_space<vmem>>, %arg2: memref<16x16xf32, #tpu.memory_space<vmem>>, %arg3: memref<2xf32, #tpu.memory_space<smem>>, %arg4: memref<1x16x256xf32, #tpu.memory_space<vmem>>) attributes {dimension_semantics = [#tpu.dimension_semantics<parallel>], iteration_bounds = array<i64: 2>, scalar_prefetch = 0 : i64, scratch_operands = 0 : i64, tpu.core_type = #tpu.core_type<tc>, window_params = [{transform_indices = @transform_0, window_bounds = array<i64: 1, 16, 256>}, {pipeline_mode = #tpu.pipeline_mode<synchronous>, transform_indices = @transform_1, window_bounds = array<i64: 16, 16>}, {transform_indices = @transform_2, window_bounds = array<i64: 2>}, {transform_indices = @transform_3, window_bounds = array<i64: 1, 16, 256>}]} {
    %c0 = arith.constant 0 : index
    %0 = memref.load %arg3[%c0] : memref<2xf32, #tpu.memory_space<smem>>
    %c1 = arith.constant 1 : index
    %1 = memref.load %arg3[%c1] : memref<2xf32, #tpu.memory_space<smem>>
    %c0_0 = arith.constant 0 : index
    %c0_1 = arith.constant 0 : index
    %c0_2 = arith.constant 0 : index
    %2 = vector.load %arg1[%c0_0, %c0_1, %c0_2] : memref<1x16x256xf32, #tpu.memory_space<vmem>>, vector<1x16x256xf32>
    %cst = arith.constant dense<0.000000e+00> : vector<1x16xf32>
    %3 = vector.multi_reduction <add>, %2, %cst [2] : vector<1x16x256xf32> to vector<1x16xf32>
    %4 = vector.broadcast %1 : f32 to vector<1x16xf32>
    %5 = arith.mulf %3, %4 : vector<1x16xf32>
    %c0_3 = arith.constant 0 : index
    %c0_4 = arith.constant 0 : index
    %6 = vector.load %arg2[%c0_3, %c0_4] : memref<16x16xf32, #tpu.memory_space<vmem>>, vector<16x16xf32>
    %cst_5 = arith.constant dense<0.000000e+00> : vector<1x16xf32>
    %7 = tpu.matmul %5, %6, %cst_5 {dimension_numbers = #tpu.dot_dimension_numbers<[1], [0], [0], [1], [0, 0, 1, 1], [], []>} : vector<1x16xf32>, vector<16x16xf32>, vector<1x16xf32> -> vector<1x16xf32>
    %8 = arith.negf %7 : vector<1x16xf32>
    %9 = math.exp %8 : vector<1x16xf32>
    %cst_6 = arith.constant 1.000000e+00 : f32
    %10 = vector.broadcast %cst_6 : f32 to vector<1x16xf32>
    %11 = arith.addf %10, %9 : vector<1x16xf32>
    %12 = arith.divf %10, %11 : vector<1x16xf32>
    %13 = vector.broadcast %0 : f32 to vector<1x16xf32>
    %14 = arith.mulf %13, %12 : vector<1x16xf32>
    %cst_7 = arith.constant 1.000000e+00 : f32
    %15 = vector.broadcast %cst_7 : f32 to vector<1x16xf32>
    %16 = arith.addf %15, %14 : vector<1x16xf32>
    %17 = vector.shape_cast %16 : vector<1x16xf32> to vector<1x16x1xf32>
    %18 = vector.broadcast %17 : vector<1x16x1xf32> to vector<1x16x256xf32>
    %19 = arith.mulf %2, %18 : vector<1x16x256xf32>
    %c0_8 = arith.constant 0 : index
    %c0_9 = arith.constant 0 : index
    %c0_10 = arith.constant 0 : index
    %20 = vector.load %arg4[%c0_8, %c0_9, %c0_10] : memref<1x16x256xf32, #tpu.memory_space<vmem>>, vector<1x16x256xf32>
    tpu.vector_store %arg4[%c0_8, %c0_9, %c0_10], %19 {strides = array<i32>} : memref<1x16x256xf32, #tpu.memory_space<vmem>>, vector<1x16x256xf32>,
    return
  }
  func.func @transform_0(%arg0: i32) -> (i32, i32, i32) {
    %c0_i32 = arith.constant 0 : i32
    %c0_i32_0 = arith.constant 0 : i32
    %c0_i32_1 = arith.constant 0 : i32
    return %arg0, %c0_i32, %c0_i32_0 : i32, i32, i32
  }
  func.func @transform_1(%arg0: i32) -> (i32, i32) {
    %c0_i32 = arith.constant 0 : i32
    %c0_i32_0 = arith.constant 0 : i32
    %c0_i32_1 = arith.constant 0 : i32
    return %c0_i32, %c0_i32_0 : i32, i32
  }
  func.func @transform_2(%arg0: i32) -> i32 {
    %c0_i32 = arith.constant 0 : i32
    %c0_i32_0 = arith.constant 0 : i32
    return %c0_i32 : i32
  }
  func.func @transform_3(%arg0: i32) -> (i32, i32, i32) {
    %c0_i32 = arith.constant 0 : i32
    %c0_i32_0 = arith.constant 0 : i32
    %c0_i32_1 = arith.constant 0 : i32
    return %arg0, %c0_i32, %c0_i32_0 : i32, i32, i32
  }
}

</mosaic_0001>

<bundles_post_ra>
// kernel: tpu_custom_call.1
= control target key start
LH: loop header
LB: loop body
LE: loop exit
PB: predicated region body
PF: predicated region fallthrough
CT: control target
= control target key end

     0   :  { %8 = vsyncpa [#allocation3], 0  ;;  %s864_s0 = inlined_call_operand.hbm [shape: f32[2,16,256], index: 0, kind: input, shape index: {}]   ;;  %s865_s1 = inlined_call_operand.hbm [shape: f32[16,16], index: 1, kind: input, shape index: {}]   ;;  %s866_s2 = inlined_call_operand.vmem [shape: f32[2], index: 2, kind: input, shape index: {}]   ;;  %s867_s3 = inlined_call_operand.hbm [shape: f32[2,16,256], index: 3, kind: output, shape index: {}]  }
   0x1   :  { %10 = vsyncpa [#allocation3 + $0x1], 0 }
   0x2   :  { %11 = vsyncpa [#allocation7], 0 }
   0x3   :  { %12 = vsyncpa [#allocation5], 0 }
   0x4   :  { %13 = vsyncpa [#allocation4], 0 }
   0x5   :  { %15 = vsyncpa [#allocation4 + $0x1], 0  ;;  %s707_s12 = smov 0   ;;  %s709_s13 = smov 0  }
   0x6   :  { %s711_s14 = smov 0   ;;  %s713_s15 = smov 0  }
   0x7 LB: > { %s728_s16 = sadd.s32 4294967295, %s677_s15   ;;  %s425_s17 = sadd.s32 4294967294, %s677_s15   ;;  %s677_s15 = sphi %s713_s15, %s877_s15   ;;  %s673_s14 = sphi %s711_s14, %s876_s14   ;;  %s669_s13 = sphi %s709_s13, %s875_s13   ;;  %s665_s12 = sphi %s707_s12, %s874_s12  }
   0x8   : > { %p41_p0 = scmp.ne.s32.totalorder %s669_s13, %s665_s12  ;;  %p42_p1 = scmp.eq.s32.totalorder %s728_s16, 0 }
   0x9   : > { %p107_p2 = scmp.eq.s32.totalorder %s728_s16, 1  ;;  %p113_p3 = scmp.eq.s32.totalorder %s425_s17, 1 }
   0xa   : > { %p737_p4 = por %p42_p1, %p41_p0  ;;  %p426_p5 = scmp.ge.s32.totalorder %s677_s15, 1 }
   0xb   : > { %p742_p6 = por %p113_p3, %p41_p0  ;;  %p120_p7 = scmp.lt.s32.totalorder %s677_s15, 3 }
   0xc   : > { %s131_s22 = sshll.u32 %s865_s1, 4  ;;  %s679_s24 = smov [#allocation6]   ;;  %s132_s22 = int_to_ptr.hbm [resolvable:$true] %s131_s22 }
   0xd   : > { %p750_p8 = pnand %p426_p5, %p120_p7  ;;  %s133_s25 = sshll.u32 %s679_s24, 4  ;;  %s134_s25 = int_to_ptr.vmem [resolvable:$true] %s133_s25 }
   0xe   : > { %s146_s28 = sshll.u32 %s866_s2, 4  ;;  %s680_s29 = smov 128   ;;  %s147_s28 = int_to_ptr.vmem [resolvable:$true] %s146_s28 }
   0xf   : > { %p460_p9 = pneg %p750_p8  ;;  %s681_s30 = smov 8  }
  0x10   : > { %s682_s4 = smov [#allocation8]   ;;  %s763_s5 = sadd.s32 1, %s677_s15  }
  0x11   : > { %p461_p10 = pnand %p460_p9, %p42_p1  ;;  %s25_s6 = ssub.s32 %s677_s15, %s763_s5 }
  0x12   : > { %p26_p12 = scmp.eq.s32.totalorder %s25_s6, 0  ;;  %s28_s7 = sadd.s32 1, %s673_s14 }
  0x13   : > { %463 = dma.hbm_to_vmem [thread:$0]  (!%p461_p10), %s132_s22, 256, %s134_s25, [#allocation7], %s680_s29, %s680_s29, %s681_s30  }
  0x14   : > { %466 = dma.vmem_to_smem (!%p461_p10), %s147_s28, 16, %s682_s4, [#allocation5]  }
  0x15   : > { %p35_p13 = scmp.ne.s32.totalorder %s673_s14, %s669_s13  ;;  %p36_p0 = scmp.eq.s32.totalorder %s677_s15, 0 }
  0x16   : > { %s772_s8 = scalar_select %p26_p12, %s673_s14, %s28_s7  }
  0x17   : > { %p37_p3 = por %p36_p0, %p35_p13  ;;  %p776_p5 = por %p107_p2, %p35_p13 }
  0x18   : > { %p477_p7 = scmp.lt.s32.totalorder %s677_s15, 2  ;;  %s157_s10 = sand.u32 1, %s673_s14  }
  0x19   : > { %s430_s11 = sshll.u32 %s157_s10, 5  ;;  %s446_s17 = sshll.u32 %s677_s15, 5 }
  0x1a   : > { %s166_s22 = scalar_lea.hbm %s864_s0, %s446_s17  ;;  %s161_s24 = scalar_lea.vmem [#allocation2], %s430_s11 }
  0x1b   : > { %s169_s25 = sshll.u32 %s161_s24, 4  ;;  %s167_s26 = sshll.u32 %s166_s22, 4  ;;  %s170_s25 = int_to_ptr.vmem [resolvable:$true] %s169_s25  ;;  %s168_s26 = int_to_ptr.hbm [resolvable:$true] %s167_s26 }
  0x1c   : > { %p786_p9 = pnand %p477_p7, %p37_p3  ;;  %s158_s28 = scalar_lea.sflag [#allocation3], %s157_s10 }
  0x1d   : > { %s573_s29 = sshra.s32 %s168_s26, 4  ;;  %s580_s7 = scalar_lea.hbm %s864_s0, 64  ;;  %s574_s29 = int_to_ptr.hbm [resolvable:$true] %s573_s29 }
  0x1e   : > { %s575_s30 = scalar_lea.hbm %s574_s29, 32  ;;  %p577_p10 = pneg %p786_p9 }
  0x1f   : > { %p576_p2 = scmp.ne.s32.totalorder %s574_s29, %s575_s30  ;;  %p581_p0 = scmp.lt.s32.totalorder %s574_s29, %s864_s0 }
  0x20   : > { %p582_p3 = scmp.lt.s32.totalorder %s580_s7, %s575_s30 }
  0x21   : > { %p578_p12 = pnand %p577_p10, %p576_p2 }
  0x22   : > { %p583_p7 = por %p582_p3, %p581_p0 }
  0x23   : > { %p579_p13 = pneg %p578_p12 }
  0x25   : > { %p584_p11 = pnand %p583_p7, %p579_p13 }
  0x27   : > { %587 = shalt.err (!%p584_p11)
}
  0x28   : > { %s683_s10 = smov 256   ;;  %s684_s20 = smov 16  }
  0x29   : > { %470 = dma.hbm_to_vmem [thread:$0]  (!%p786_p9), %s168_s26, 512, %s170_s25, %s158_s28, %s683_s10, %s683_s10, %s684_s20  }
  0x2a   : > { %181 = sbr.rel (%p750_p8) target bundleno = 484 (0x1e4), region = 32  ;;  %s803_s21 = sand.u32 (!%p750_p8), 1, %s669_s13  }
  0x2b   : > { %s434_s22 = sshll.u32 (!%p750_p8), %s803_s21, 5  ;;  %s184_s24 = scalar_lea.sflag (!%p750_p8), [#allocation3], %s803_s21 }
  0x2c   : > { %s187_s29 = scalar_lea.vmem (!%p750_p8), [#allocation2], %s434_s22 }
  0x2f   : > { %648 = dma.done.wait (%p737_p4), %s184_s24, 512  }
  0x30   : > { %650 = vsyncadd (%p737_p4), %s184_s24, 4294966784 }
  0x31   : > { %652 = dma.done.wait (%p42_p1), [#allocation7], 256  }
  0x32   : > { %654 = vsyncadd (%p42_p1), [#allocation7], 4294967040 }
  0x33   : > { %656 = dma.done.wait (%p42_p1), [#allocation5], 16  }
  0x34   : > { %658 = vsyncadd (%p42_p1), [#allocation5], 4294967280 }
  0x35   : > { %203 = sfence }
  0x36   : > { %v224_v0 = vld [vmem:[%s187_s29] sm:$0xff]  ;;  %v225_v1 = vld [vmem:[%s187_s29 + $0x8] sm:$0xff]  ;;  %v821_v3 = vld [vmem:[%s187_s29 + $0x10] sm:$0xff]  ;;  %s438_s18 = sld [smem:[#allocation8 + $0x1]]  ;;  %v241_v9 = vlaneseq  ;;  %vm246_vm0 = vcmask 130112   ;;  %vm248_vm1 = vcmask 130048  }
  0x37   : > { %v228_v2 = vadd.f32 %v225_v1, %v224_v0  ;;  %v823_v4 = vld [vmem:[%s187_s29 + $0x18] sm:$0xff]  ;;  %v238_v6 = vld [vmem:[#allocation6 + $0x8] sm:$0xff]  ;;  %v237_v7 = vld [vmem:[#allocation6] sm:$0xff]  ;;  %s222_s23 = sld [smem:[#allocation8]]  ;;  %s221_s25 = scalar_lea.vmem [#allocation9], %s434_s22 }
  0x38   : > { %v231_v5 = vadd.f32 %v823_v4, %v821_v3  ;;  %265 = vmatpush.msra.mxu0 %v238_v6  ;;  %v242_v11 = vand.u32 127, %v241_v9  ;;  %v295_v19 = vshrl.u32 %v241_v9, 7  ;;  %s447_s26 = sshll.u32 %s728_s16, 5  ;;  %s327_s4 = sshll.u32 %s221_s25, 4  ;;  %s328_s4 = int_to_ptr.vmem [resolvable:$true] %s327_s4 }
  0x39   : > { %229 = vadd.xlane.f32.xlu0 %v228_v2  ;;  %s326_s30 = scalar_lea.hbm %s867_s3, %s447_s26  ;;  %s315_s7 = scalar_lea.sflag [#allocation4], %s803_s21 }
  0x3a   : > { %266 = vmatpush.msra.mxu0 %v237_v7  ;;  %v244_v13 = vadd.s32 4294967288, %v242_v11  ;;  %521 = vset.pattern.permute.xlu1 %v295_v19  ;;  %v302_v20 = vadd.s32 8, %v295_v19  ;;  %s329_s6 = sshll.u32 %s326_s30, 4  ;;  %s623_s20 = scalar_lea.hbm %s867_s3, 64  ;;  %s330_s6 = int_to_ptr.hbm [resolvable:$true] %s329_s6 }
  0x3b   : > { %s617_s11 = sshra.s32 %s330_s6, 4  ;;  %s618_s11 = int_to_ptr.hbm [resolvable:$true] %s617_s11 }
  0x3c   : > { %v234_v10 = vstv %s438_s18  ;;  %523 = vset.pattern.permute.xlu0 %v302_v20  ;;  %s619_s16 = scalar_lea.hbm %s618_s11, 32  ;;  %p624_p11 = scmp.lt.s32.totalorder %s618_s11, %s867_s3 }
  0x3d   : > { %v290_v33 = vstv %s222_s23  ;;  %p620_p1 = scmp.ne.s32.totalorder %s618_s11, %s619_s16  ;;  %p625_p9 = scmp.lt.s32.totalorder %s623_s20, %s619_s16 }
  0x3f   : > { %p621_p4 = pnand %p620_p1, %p776_p5  ;;  %p626_p2 = por %p625_p9, %p624_p11 }
  0x41   : > { %232 = vadd.xlane.f32.xlu0 %v231_v5  ;;  %p622_p8 = pneg %p621_p4 }
  0x43   : > { %p627_p10 = pnand %p626_p2, %p622_p8 }
  0xac   : > { %v230_v8 = vpop.xlane.xlu0 %229 }
  0xad   : > { %v235_v12 = vmul.f32 %v234_v10, %v230_v8 }
  0xaf   : > { %v243_v16 = vperm.slane %v235_v12, %v242_v11 }
  0xb4   : > { %v233_v14 = vpop.xlane.xlu0 %232 }
  0xb5   : > { %v236_v15 = vmul.f32 %v234_v10, %v233_v14 }
  0xb7   : > { %v245_v17 = vperm.slane %v236_v15, %v244_v13 }
  0xb9   : > { %v247_v18 = vsel %vm246_vm0, %v245_v17, %v243_v16 }
  0xba   : > { %439 = vmatmul.msk.f32.vlgmr.msra.gmra.mxu0 %vm248_vm1, %v247_v18 }
 0x137   : > { %v268_v21 = vpop.f32.mrf.mxu0 }
 0x138   : > { %v440_v22 = vmul.f32 -1.442695, %v268_v21 }
 0x13a   : > { %524 = vpow2.f32 %v440_v22 }
 0x140   : > { %v525_v23 = vpop.eup %524 }
 0x141   : > { %v274_v24 = vadd.f32 1.0, %v525_v23 }
 0x143   : > { %526 = vrcp.f32 %v274_v24  ;;  %v286_v28 = vand.u32 2147483648, %v274_v24  ;;  %v284_v30 = vand.u32 2147483647, %v274_v24  ;;  %vm280_vm3 = vweird.f32 %v274_v24 }
 0x145   : > { %v287_v32 = vor.u32 1.1754944e-38, %v286_v28  ;;  %vm285_vm5 = vcmp.eq.f32.partialorder %v284_v30, 8.507059e+37 }
 0x149   : > { %v527_v25 = vpop.eup %526 }
 0x14a   : > { %v276_v26 = vmul.f32 %v527_v25, %v274_v24  ;;  %vm281_vm2 = vweird.f32 %v527_v25 }
 0x14b   : > { %vm282_vm4 = vmor %vm280_vm3, %vm281_vm2 }
 0x14c   : > { %v277_v27 = vsub.f32 1.0, %v276_v26 }
 0x14e   : > { %v278_v29 = vmul.f32 %v527_v25, %v277_v27 }
 0x150   : > { %v279_v31 = vadd.f32 %v527_v25, %v278_v29 }
 0x152   : > { %v283_v34 = vsel %vm282_vm4, %v527_v25, %v279_v31 }
 0x153   : > { %v288_v35 = vsel %vm285_vm5, %v287_v32, %v283_v34 }
 0x154   : > { %v291_v36 = vmul.f32 %v290_v33, %v288_v35 }
 0x156   : > { %v292_v37 = vadd.f32 1.0, %v291_v36 }
 0x158   : > { %v293_v38 = vperm.slane %v292_v37, 0 }
 0x15a   : > { %298 = vperm.xlu1 %521, %v293_v38  }
 0x162   : > { %522 = vset.pattern.permute.xlu1 %v302_v20 }
 0x16a   : > { %304 = vperm.xlu1 %522, %v293_v38  }
 0x1cc   : > { %v299_v39 = vpop.permute.xlu1 %298 }
 0x1cd   : > { %v306_v40 = vmul.f32 %v299_v39, %v224_v0  ;;  %v307_v41 = vmul.f32 %v299_v39, %v225_v1 }
 0x1cf   : > { %310 = vst [vmem:[%s221_s25] sm:$0xff] %v306_v40 }
 0x1d0   : > { %311 = vst [vmem:[%s221_s25 + $0x8] sm:$0xff] %v307_v41 }
 0x1dc   : > { %v305_v42 = vpop.permute.xlu1 %304 }
 0x1dd   : > { %v308_v43 = vmul.f32 %v305_v42, %v821_v3  ;;  %v309_v44 = vmul.f32 %v305_v42, %v823_v4 }
 0x1df   : > { %312 = vst [vmem:[%s221_s25 + $0x10] sm:$0xff] %v308_v43 }
 0x1e0   : > { %313 = vst [vmem:[%s221_s25 + $0x18] sm:$0xff] %v309_v44 }
 0x1e1   : > { %630 = shalt.err (!%p627_p10)
}
 0x1e2   : > { %s685_s21 = smov 256   ;;  %s686_s29 = smov 16  }
 0x1e3   : > { %458 = dma.vmem_to_hbm [thread:$0]  (%p776_p5), %s328_s4, 512, %s330_s6, %s315_s7, %s685_s21, %s685_s21, %s686_s29  }
 0x1e4 PF: > { %s344_s18 = sand.u32 1, %s665_s12   ;;  %p873_p12 = scmp.ge.s32.totalorder %s677_s15, 2 }
 0x1e5   : > { %s345_s23 = scalar_lea.sflag [#allocation4], %s344_s18 }
 0x1e6   : > { %p472_p13 = pnand %p873_p12, %p742_p6 }
 0x1e8   : > { %p473_p0 = pneg %p472_p13 }
 0x1ea   : > { %660 = dma.done.wait (%p473_p0), %s345_s23, 512  }
 0x1eb   : > { %662 = vsyncadd (%p473_p0), %s345_s23, 4294966784  ;;  %p18_p3 = scmp.ge.s32.totalorder %s763_s5, 4   ;;  %s874_s12 = smov %s669_s13 }
 0x1ec   : > { %s875_s13 = smov %s673_s14  ;;  %s876_s14 = smov %s772_s8 }
 0x1ed   : > { %s877_s15 = smov %s763_s5  ;;  %20 = sbr.rel (!%p18_p3) target bundleno = 7 (0x7), region = 86 }
 0x1f2   :  { %351 = vsyncpa [#allocation3], 1 }
 0x1f3   :  { %353 = vsyncpa [#allocation3 + $0x1], 1 }
 0x1f4   :  { %354 = vsyncpa [#allocation7], 1 }
 0x1f5   :  { %355 = vsyncpa [#allocation4], 1 }
 0x1f6   :  { %357 = vsyncpa [#allocation4 + $0x1], 1 }
 0x1f7   :  { %358 = vsyncpa [#allocation5], 1 }
 0x1f8   :  { %360 = vsyncpa [#allocation5 + $0x1], 1 }

</bundles_post_ra>
